<compile_context>
chip_gen: v7x
topology: tpu7x:2x2x1
jax: 0.10.0
libtpu: 0.0.40
codegen_flags: <defaults>
</compile_context>

<pallas_src>
import functools
import itertools

import jax
import jax.numpy as jnp
from jax import lax
from jax.experimental import pallas as pl
from jax.experimental.pallas import tpu as pltpu


# Double-buffered VMEM residency of the two streamed blocks, with the source
# dim padded to 8 sublanes (S -> 8 for pr, 1 -> 8 for t0):
#   (pr + t0) blocks * 2 buffers * 8 sublanes * tk lanes * 4 B = 128 * tk bytes.
# A 16 MiB block budget keeps every generation comfortable (v5e 128 MiB phys /
# 16 MiB default scoped, v6e 128 MiB phys, v7x 64 MiB phys / 32 MiB scoped).
_VMEM_BLOCK_BUDGET = 16 << 20
_MAX_TIME_TILE = (_VMEM_BLOCK_BUDGET // 128) // 128 * 128     # 131072 lanes


def _sisdr_kernel(pr_ref, t_ref, out_ref, pt_acc, pp_acc, tt_acc, *, eps, t_len):
    """Grid = (batch, time-chunk).  Accumulates time-axis dot products against
    target source 0 in tiny VMEM scratch; on the last chunk forms the
    per-prediction-source SI-SNR column and reduces with max (== the reference
    max over permutations of all_sisnrs[:, 0, :])."""
    k = pl.program_id(1)
    tk = pr_ref.shape[-1]

    @pl.when(k == 0)
    def _():
        pt_acc[...] = jnp.zeros_like(pt_acc)
        pp_acc[...] = jnp.zeros_like(pp_acc)
        tt_acc[...] = jnp.zeros_like(tt_acc)

    pr = pr_ref[0]               # (S, tk)
    t0 = t_ref[0, 0:1, :]        # (1, tk) -- target source 0 only

    if t_len % tk:               # static: ragged last chunk -> mask stale lanes
        lane = lax.broadcasted_iota(jnp.int32, (1, tk), 1)
        valid = (k * tk + lane) < t_len
        pr = jnp.where(valid, pr, 0.0)
        t0 = jnp.where(valid, t0, 0.0)

    # VPU multiplies + lane (XLU) reductions; the kernel is HBM-bound so this
    # is hidden under the DMA and avoids MXU pushes / a ones constant.
    pt_acc[...] += jnp.sum(pr * t0, axis=-1, keepdims=True)   # (S, 1)  <p_i, t0>
    pp_acc[...] += jnp.sum(pr * pr, axis=-1, keepdims=True)   # (S, 1)  <p_i, p_i>
    tt_acc[...] += jnp.sum(t0 * t0, axis=-1, keepdims=True)   # (1, 1)  <t0, t0>

    @pl.when(k == pl.num_programs(1) - 1)
    def _():
        PT = pt_acc[...]                                   # (S, 1)
        PP = pp_acc[...]                                   # (S, 1)
        TT = tt_acc[...]                                   # (1, 1), broadcasts
        alpha = PT / (TT + eps)
        s_dot = alpha * alpha * TT                         # <s_t, s_t>
        e_dot = PP - 2.0 * alpha * PT + alpha * alpha * TT # <e_t, e_t>
        sisnr = 10.0 * jnp.log10(s_dot / (e_dot + eps))    # (S, 1)
        out_ref[0] = jnp.max(sisnr, axis=0, keepdims=True) # best over pred srcs


def _build_call(B, S, T, tk, eps, *, t0_only):
    n_chunks = pl.cdiv(T, tk)
    # Sublane-padded, double-buffered block residency -> scoped VMEM limit.
    vmem_limit = int(min(32 << 20, max(16 << 20, 128 * tk + (4 << 20))))
    t_rows = 1 if t0_only else S
    cost = pl.CostEstimate(
        flops=2 * (2 * S + 1) * B * T,
        transcendentals=B * S,
        bytes_accessed=(S + t_rows) * B * T * 4 + B * 4)
    return pl.pallas_call(
        functools.partial(_sisdr_kernel, eps=eps, t_len=T),
        out_shape=jax.ShapeDtypeStruct((B, 1, 1), jnp.float32),
        grid_spec=pltpu.PrefetchScalarGridSpec(
            num_scalar_prefetch=0,
            grid=(B, n_chunks),
            in_specs=[
                pl.BlockSpec((1, S, tk), lambda b, k: (b, 0, k)),
                pl.BlockSpec((1, t_rows, tk), lambda b, k: (b, 0, k)),
            ],
            out_specs=pl.BlockSpec((1, 1, 1), lambda b, k: (b, 0, 0)),
            scratch_shapes=[
                pltpu.VMEM((S, 1), jnp.float32),   # PT accumulator
                pltpu.VMEM((S, 1), jnp.float32),   # PP accumulator
                pltpu.VMEM((1, 1), jnp.float32),   # TT accumulator
            ],
        ),
        compiler_params=pltpu.CompilerParams(
            dimension_semantics=("parallel", "arbitrary"),
            vmem_limit_bytes=vmem_limit),
        cost_estimate=cost,
    )


def perm_invariant_sisdr(pr_batch, t_batch, *, eps=1e-9, zero_mean=False,
                         backward_loss=True, tk=None):
    """Pallas equivalent of PermInvariantSISDR.forward with default flags."""
    # normalize_input: truncate to common length (+ optional zero mean) — glue.
    min_len = min(pr_batch.shape[-1], t_batch.shape[-1])
    pr_batch = pr_batch[:, :, :min_len].astype(jnp.float32)
    t_batch = t_batch[:, :, :min_len].astype(jnp.float32)
    if zero_mean:
        # TODO(synk): fuse zero-mean into the kernel if this flag is used in
        # production (currently an extra HBM pass in the wrapper).
        pr_batch = pr_batch - jnp.mean(pr_batch, axis=-1, keepdims=True)
        t_batch = t_batch - jnp.mean(t_batch, axis=-1, keepdims=True)

    B, S, T = pr_batch.shape
    assert t_batch.shape == (B, S, T)

    if tk is None:
        # Whole signal as one tile when it fits the VMEM budget (typical audio
        # lengths); otherwise large lane-aligned chunks + in-kernel tail mask.
        tk = T if T <= _MAX_TIME_TILE else _MAX_TIME_TILE
    else:
        tk = min(int(tk), T)
        if tk != T and tk % 128:
            raise ValueError("tk must be a multiple of 128 (or the full length)")

    # TODO(synk): on v7x with very small B, additionally core-split the time
    # axis so the second TensorCore gets work (single grid axis 'parallel'
    # over batch is enough everywhere else).
    try:
        best = _build_call(B, S, T, tk, eps, t0_only=True)(pr_batch, t_batch)
    except Exception:
        # Fallback for Mosaic versions that reject 1-sublane (1, 1, tk) input
        # windows: stream all S target rows (kernel ignores rows 1..S-1).
        best = _build_call(B, S, T, tk, eps, t0_only=False)(pr_batch, t_batch)

    best_sisdr = jnp.mean(best[:, 0, 0])   # return_individual_results=False
    # TODO(synk): improvement/initial_mixtures (SISDRi) branch and the
    # return_best_permutation index output are not implemented (non-default).
    if backward_loss:
        return -best_sisdr
    return best_sisdr


def _reference_jax(pr_batch, t_batch, eps=1e-9):
    """Literal transcription of the PyTorch forward (default flags)."""
    B, S, T = pr_batch.shape

    def dot(x, y):
        return jnp.sum(x * y, axis=-1, keepdims=True)

    t_t_diag = dot(t_batch, t_batch)
    sisnr_l = []
    for perm in itertools.permutations(range(S)):
        p = pr_batch[:, list(perm), :]
        s_t = dot(p, t_batch) / (t_t_diag + eps) * t_batch
        e_t = p - s_t
        sisnr_l.append(10.0 * jnp.log10(dot(s_t, s_t) / (dot(e_t, e_t) + eps)))
    all_sisnrs = jnp.concatenate(sisnr_l, axis=-1)       # (B, S, n_perms)
    best = jnp.max(all_sisnrs[:, 0, :], axis=-1)         # (B,)
    return -jnp.mean(best)


if __name__ == "__main__":
    key = jax.random.PRNGKey(0)
    k1, k2 = jax.random.split(key)

    checks = [
        dict(B=2, S=3, T=256, tk=None),   # aligned, single time tile
        dict(B=2, S=3, T=300, tk=None),   # full-length unaligned single tile
        dict(B=2, S=3, T=384, tk=128),    # multi-chunk accumulator path
        dict(B=2, S=3, T=300, tk=128),    # multi-chunk + ragged masked tail
    ]
    for c in checks:
        B, S, T = c["B"], c["S"], c["T"]
        pr = jax.random.normal(jax.random.fold_in(k1, T), (B, S, T), jnp.float32)
        tg = jax.random.normal(jax.random.fold_in(k2, T), (B, S, T), jnp.float32)
        out = jax.block_until_ready(perm_invariant_sisdr(pr, tg, tk=c["tk"]))
        ref = _reference_jax(pr, tg)
        assert jnp.allclose(out, ref, rtol=1e-3, atol=1e-3), (c, out, ref)
    print("KERNEL_OK")
</pallas_src>

<mosaic_0001>
module attributes {stable_mosaic.version = 11 : i64} {
  func.func @_sisdr_kernel(%arg0: i32, %arg1: i32, %arg2: memref<1x3x256xf32, #tpu.memory_space<vmem>>, %arg3: memref<1x3x256xf32, #tpu.memory_space<vmem>>, %arg4: memref<1x1x1xf32, #tpu.memory_space<vmem>>, %arg5: memref<3x1xf32, #tpu.memory_space<vmem>>, %arg6: memref<3x1xf32, #tpu.memory_space<vmem>>, %arg7: memref<1x1xf32, #tpu.memory_space<vmem>>) attributes {dimension_semantics = [#tpu.dimension_semantics<parallel>, #tpu.dimension_semantics<arbitrary>], iteration_bounds = array<i64: 2, 1>, scalar_prefetch = 0 : i64, scratch_operands = 3 : i64, tpu.core_type = #tpu.core_type<tc>, window_params = [{transform_indices = @transform_0, window_bounds = array<i64: 1, 3, 256>}, {transform_indices = @transform_1, window_bounds = array<i64: 1, 3, 256>}, {transform_indices = @transform_2, window_bounds = array<i64: 1, 1, 1>}]} {
    %c0_i32 = arith.constant 0 : i32
    %0 = arith.cmpi eq, %arg1, %c0_i32 : i32
    %1 = arith.extui %0 : i1 to i32
    %c0_i32_0 = arith.constant 0 : i32
    %2 = arith.cmpi ne, %1, %c0_i32_0 : i32
    scf.if %2 {
      %cst_22 = arith.constant 0.000000e+00 : f32
      %29 = vector.broadcast %cst_22 : f32 to vector<3x1xf32>
      %c0_23 = arith.constant 0 : index
      %c0_24 = arith.constant 0 : index
      %30 = vector.load %arg5[%c0_23, %c0_24] : memref<3x1xf32, #tpu.memory_space<vmem>>, vector<3x1xf32>
      tpu.vector_store %arg5[%c0_23, %c0_24], %29 {strides = array<i32>} : memref<3x1xf32, #tpu.memory_space<vmem>>, vector<3x1xf32>,
      %cst_25 = arith.constant 0.000000e+00 : f32
      %31 = vector.broadcast %cst_25 : f32 to vector<3x1xf32>
      %c0_26 = arith.constant 0 : index
      %c0_27 = arith.constant 0 : index
      %32 = vector.load %arg6[%c0_26, %c0_27] : memref<3x1xf32, #tpu.memory_space<vmem>>, vector<3x1xf32>
      tpu.vector_store %arg6[%c0_26, %c0_27], %31 {strides = array<i32>} : memref<3x1xf32, #tpu.memory_space<vmem>>, vector<3x1xf32>,
      %cst_28 = arith.constant 0.000000e+00 : f32
      %33 = vector.broadcast %cst_28 : f32 to vector<1x1xf32>
      %c0_29 = arith.constant 0 : index
      %c0_30 = arith.constant 0 : index
      %34 = vector.load %arg7[%c0_29, %c0_30] : memref<1x1xf32, #tpu.memory_space<vmem>>, vector<1x1xf32>
      tpu.vector_store %arg7[%c0_29, %c0_30], %33 {strides = array<i32>} : memref<1x1xf32, #tpu.memory_space<vmem>>, vector<1x1xf32>,
    } else {
    }
    %c0 = arith.constant 0 : index
    %c0_1 = arith.constant 0 : index
    %c0_2 = arith.constant 0 : index
    %3 = vector.load %arg2[%c0, %c0_1, %c0_2] : memref<1x3x256xf32, #tpu.memory_space<vmem>>, vector<1x3x256xf32>
    %4 = vector.shape_cast %3 : vector<1x3x256xf32> to vector<3x256xf32>
    %c0_3 = arith.constant 0 : index
    %c0_4 = arith.constant 0 : index
    %c0_5 = arith.constant 0 : index
    %5 = vector.load %arg3[%c0_3, %c0_4, %c0_5] : memref<1x3x256xf32, #tpu.memory_space<vmem>>, vector<1x1x256xf32>
    %6 = vector.shape_cast %5 : vector<1x1x256xf32> to vector<1x256xf32>
    %c0_6 = arith.constant 0 : index
    %c0_7 = arith.constant 0 : index
    %7 = vector.load %arg5[%c0_6, %c0_7] : memref<3x1xf32, #tpu.memory_space<vmem>>, vector<3x1xf32>
    %8 = vector.broadcast %6 : vector<1x256xf32> to vector<3x256xf32>
    %9 = arith.mulf %4, %8 : vector<3x256xf32>
    %cst = arith.constant dense<0.000000e+00> : vector<3xf32>
    %10 = vector.multi_reduction <add>, %9, %cst [1] : vector<3x256xf32> to vector<3xf32>
    %11 = vector.shape_cast %10 : vector<3xf32> to vector<3x1xf32>
    %12 = arith.addf %7, %11 : vector<3x1xf32>
    %c0_8 = arith.constant 0 : index
    %c0_9 = arith.constant 0 : index
    %13 = vector.load %arg5[%c0_8, %c0_9] : memref<3x1xf32, #tpu.memory_space<vmem>>, vector<3x1xf32>
    tpu.vector_store %arg5[%c0_8, %c0_9], %12 {strides = array<i32>} : memref<3x1xf32, #tpu.memory_space<vmem>>, vector<3x1xf32>,
    %c0_10 = arith.constant 0 : index
    %c0_11 = arith.constant 0 : index
    %14 = vector.load %arg6[%c0_10, %c0_11] : memref<3x1xf32, #tpu.memory_space<vmem>>, vector<3x1xf32>
    %15 = arith.mulf %4, %4 : vector<3x256xf32>
    %cst_12 = arith.constant dense<0.000000e+00> : vector<3xf32>
    %16 = vector.multi_reduction <add>, %15, %cst_12 [1] : vector<3x256xf32> to vector<3xf32>
    %17 = vector.shape_cast %16 : vector<3xf32> to vector<3x1xf32>
    %18 = arith.addf %14, %17 : vector<3x1xf32>
    %c0_13 = arith.constant 0 : index
    %c0_14 = arith.constant 0 : index
    %19 = vector.load %arg6[%c0_13, %c0_14] : memref<3x1xf32, #tpu.memory_space<vmem>>, vector<3x1xf32>
    tpu.vector_store %arg6[%c0_13, %c0_14], %18 {strides = array<i32>} : memref<3x1xf32, #tpu.memory_space<vmem>>, vector<3x1xf32>,
    %c0_15 = arith.constant 0 : index
    %c0_16 = arith.constant 0 : index
    %20 = vector.load %arg7[%c0_15, %c0_16] : memref<1x1xf32, #tpu.memory_space<vmem>>, vector<1x1xf32>
    %21 = arith.mulf %6, %6 : vector<1x256xf32>
    %cst_17 = arith.constant dense<0.000000e+00> : vector<1xf32>
    %22 = vector.multi_reduction <add>, %21, %cst_17 [1] : vector<1x256xf32> to vector<1xf32>
    %23 = vector.shape_cast %22 : vector<1xf32> to vector<1x1xf32>
    %24 = arith.addf %20, %23 : vector<1x1xf32>
    %c0_18 = arith.constant 0 : index
    %c0_19 = arith.constant 0 : index
    %25 = vector.load %arg7[%c0_18, %c0_19] : memref<1x1xf32, #tpu.memory_space<vmem>>, vector<1x1xf32>
    tpu.vector_store %arg7[%c0_18, %c0_19], %24 {strides = array<i32>} : memref<1x1xf32, #tpu.memory_space<vmem>>, vector<1x1xf32>,
    %c0_i32_20 = arith.constant 0 : i32
    %26 = arith.cmpi eq, %arg1, %c0_i32_20 : i32
    %27 = arith.extui %26 : i1 to i32
    %c0_i32_21 = arith.constant 0 : i32
    %28 = arith.cmpi ne, %27, %c0_i32_21 : i32
    scf.if %28 {
      %c0_22 = arith.constant 0 : index
      %c0_23 = arith.constant 0 : index
      %29 = vector.load %arg5[%c0_22, %c0_23] : memref<3x1xf32, #tpu.memory_space<vmem>>, vector<3x1xf32>
      %c0_24 = arith.constant 0 : index
      %c0_25 = arith.constant 0 : index
      %30 = vector.load %arg6[%c0_24, %c0_25] : memref<3x1xf32, #tpu.memory_space<vmem>>, vector<3x1xf32>
      %c0_26 = arith.constant 0 : index
      %c0_27 = arith.constant 0 : index
      %31 = vector.load %arg7[%c0_26, %c0_27] : memref<1x1xf32, #tpu.memory_space<vmem>>, vector<1x1xf32>
      %cst_28 = arith.constant 9.99999971E-10 : f32
      %32 = vector.broadcast %cst_28 : f32 to vector<1x1xf32>
      %33 = arith.addf %31, %32 : vector<1x1xf32>
      %34 = vector.broadcast %33 : vector<1x1xf32> to vector<3x1xf32>
      %35 = arith.divf %29, %34 : vector<3x1xf32>
      %36 = arith.mulf %35, %35 : vector<3x1xf32>
      %37 = vector.broadcast %31 : vector<1x1xf32> to vector<3x1xf32>
      %38 = arith.mulf %36, %37 : vector<3x1xf32>
      %cst_29 = arith.constant 2.000000e+00 : f32
      %39 = vector.broadcast %cst_29 : f32 to vector<3x1xf32>
      %40 = arith.mulf %39, %35 : vector<3x1xf32>
      %41 = arith.mulf %40, %29 : vector<3x1xf32>
      %42 = arith.subf %30, %41 : vector<3x1xf32>
      %43 = arith.mulf %35, %35 : vector<3x1xf32>
      %44 = vector.broadcast %31 : vector<1x1xf32> to vector<3x1xf32>
      %45 = arith.mulf %43, %44 : vector<3x1xf32>
      %46 = arith.addf %42, %45 : vector<3x1xf32>
      %cst_30 = arith.constant 9.99999971E-10 : f32
      %47 = vector.broadcast %cst_30 : f32 to vector<3x1xf32>
      %48 = arith.addf %46, %47 : vector<3x1xf32>
      %49 = arith.divf %38, %48 : vector<3x1xf32>
      %50 = math.log %49 : vector<3x1xf32>
      %cst_31 = arith.constant 0.434294492 : f32
      %51 = vector.broadcast %cst_31 : f32 to vector<3x1xf32>
      %52 = arith.mulf %50, %51 : vector<3x1xf32>
      %cst_32 = arith.constant 1.000000e+01 : f32
      %53 = vector.broadcast %cst_32 : f32 to vector<3x1xf32>
      %54 = arith.mulf %53, %52 : vector<3x1xf32>
      %cst_33 = arith.constant dense<0xFF800000> : vector<1xf32>
      %55 = vector.multi_reduction <maximumf>, %54, %cst_33 [0] : vector<3x1xf32> to vector<1xf32>
      %56 = vector.shape_cast %55 : vector<1xf32> to vector<1x1xf32>
      %c0_34 = arith.constant 0 : index
      %c0_35 = arith.constant 0 : index
      %c0_36 = arith.constant 0 : index
      %57 = vector.load %arg4[%c0_34, %c0_35, %c0_36] : memref<1x1x1xf32, #tpu.memory_space<vmem>>, vector<1x1x1xf32>
      %58 = vector.shape_cast %57 : vector<1x1x1xf32> to vector<1x1xf32>
      %59 = vector.shape_cast %56 : vector<1x1xf32> to vector<1x1x1xf32>
      tpu.vector_store %arg4[%c0_34, %c0_35, %c0_36], %59 {strides = array<i32>} : memref<1x1x1xf32, #tpu.memory_space<vmem>>, vector<1x1x1xf32>,
    } else {
    }
    return
  }
  func.func @transform_0(%arg0: i32, %arg1: i32) -> (i32, i32, i32) {
    %c0_i32 = arith.constant 0 : i32
    %c0_i32_0 = arith.constant 0 : i32
    return %arg0, %c0_i32, %arg1 : i32, i32, i32
  }
  func.func @transform_1(%arg0: i32, %arg1: i32) -> (i32, i32, i32) {
    %c0_i32 = arith.constant 0 : i32
    %c0_i32_0 = arith.constant 0 : i32
    return %arg0, %c0_i32, %arg1 : i32, i32, i32
  }
  func.func @transform_2(%arg0: i32, %arg1: i32) -> (i32, i32, i32) {
    %c0_i32 = arith.constant 0 : i32
    %c0_i32_0 = arith.constant 0 : i32
    %c0_i32_1 = arith.constant 0 : i32
    return %arg0, %c0_i32, %c0_i32_0 : i32, i32, i32
  }
}

</mosaic_0001>

<bundles_post_ra>
// kernel: tpu_custom_call.1
= control target key start
LH: loop header
LB: loop body
LE: loop exit
PB: predicated region body
PF: predicated region fallthrough
CT: control target
= control target key end

     0   :  { %s479_s9 = smov 0   ;;  %s481_s10 = smov 0   ;;  %s531_s0 = inlined_call_operand.vmem [shape: f32[2,3,256], index: 0, kind: input, shape index: {}]   ;;  %s532_s1 = inlined_call_operand.vmem [shape: f32[2,3,256], index: 1, kind: input, shape index: {}]   ;;  %s533_s2 = inlined_call_operand.vmem [shape: f32[2,1,1], index: 2, kind: output, shape index: {}]  }
   0x1   :  { %s483_s11 = smov 0  }
   0x2 LB: > { %s24_s12 = sadd.s32 1, %s457_s10  ;;  %p399_p0 = scmp.ge.s32.totalorder %s461_s11, 1  ;;  %s461_s11 = sphi %s483_s11, %s12_s11   ;;  %s457_s10 = sphi %s481_s10, %s535_s10   ;;  %s453_s9 = sphi %s479_s9, %s534_s9  }
   0x3   : > { %p26_p1 = scmp.ge.s32.totalorder %s24_s12, 2  ;;  %p148_p2 = scmp.lt.s32.totalorder %s461_s11, 3 }
   0x5   : > { %s537_s12 = smov (%p26_p1, %s24_s12), 0  ;;  %p149_p3 = pnand %p399_p0, %p148_p2 }
   0x6   : > { %p182_p4 = scmp.lt.s32.totalorder (!%p149_p3), %s453_s9, 1  ;;  %v217_v0 = vlaneseq (!%p149_p3)  ;;  %vm211_vm0 = vcmask (!%p149_p3), 0   ;;  %v463_v2 = vmov (!%p149_p3), 0.0   ;;  %vm265_vm1 = vcmask (!%p149_p3), 1040384  }
   0x7   : > { %152 = sbr.rel (%p149_p3) target bundleno = 248 (0xf8), region = 28  ;;  %212 = vst.msk [vmem:[#allocation4] sm:$0x1] (!%p149_p3), %vm211_vm0, %v463_v2  ;;  %vm231_vm2 = vcmask (!%p149_p3), 1042432   ;;  %vm208_vm3 = vcmask (!%p149_p3), 2048  }
   0x8   : > { %v218_v1 = vshrl.u32 (!%p149_p3), %v217_v0, 7  ;;  %209 = vst.msk [vmem:[#allocation2] sm:$0x7] (!%p149_p3), %vm208_vm3, %v463_v2  ;;  %210 = vst.msk [vmem:[#allocation3] sm:$0x7] (!%p149_p3), %vm208_vm3, %v463_v2 }
   0xa   : > { %v219_v3 = vsub.s32 (!%p149_p3), 0, %v218_v1  ;;  %v223_v4 = vsub.s32 (!%p149_p3), 1, %v218_v1 }
   0xe   : > { %s539_s9 = smov (!%p182_p4, %s453_s9), 1  ;;  %v252_v26 = vld [vmem:[#allocation4] sm:$0x1] }
   0xf   : > { %s406_s13 = sshll.u32 %s539_s9, 3  ;;  %v240_v27 = vld [vmem:[#allocation3] sm:$0x7]  ;;  %v215_v32 = vld [vmem:[#allocation2] sm:$0x7]  ;;  %s203_s22 = scalar_lea.vmem %s533_s2, %s539_s9 }
  0x10   : > { %s199_s16 = scalar_lea.vmem %s532_s1, %s406_s13  ;;  %s189_s19 = scalar_lea.vmem %s531_s0, %s406_s13 }
  0x11   : > { %v214_v5 = vld [vmem:[%s199_s16] ss:$4 sm:$0x3] }
  0x12   : > { %v213_v6 = vld [vmem:[%s189_s19] sm:$0x77]  ;;  %v253_v7 = vmul.f32 %v214_v5, %v214_v5  ;;  %v224_v8 = vrot.slane %v214_v5, %v223_v4  ;;  %v220_v9 = vrot.slane %v214_v5, %v219_v3 }
  0x13   : > { %v241_v10 = vmul.f32 %v213_v6, %v213_v6 }
  0x14   : > { %v258_v11 = vrot.slane %v253_v7, %v219_v3  ;;  %v262_v12 = vrot.slane %v253_v7, %v223_v4  ;;  %v225_v13 = vcombine.low %v220_v9, %v224_v8 }
  0x15   : > { %v243_v14 = vcombine.high %v241_v10, %v241_v10  ;;  %v245_v15 = vsel %vm231_vm2, %v241_v10, 0.0 }
  0x16   : > { %v266_v16 = vsel %vm265_vm1, %v258_v11, 0.0  ;;  %v267_v17 = vsel %vm265_vm1, %v262_v12, 0.0  ;;  %v227_v18 = vmul.f32 %v225_v13, %v213_v6 }
  0x17   : > { %v246_v19 = vsel %vm231_vm2, %v243_v14, 0.0  ;;  %v268_v20 = vadd.f32 %v267_v17, %v266_v16 }
  0x18   : > { %v247_v21 = vadd.f32 %v246_v19, %v245_v15  ;;  %v229_v22 = vcombine.high %v227_v18, %v227_v18  ;;  %v232_v23 = vsel %vm231_vm2, %v227_v18, 0.0 }
  0x19   : > { %269 = vadd.xlane.f32.xlu0 %v268_v20 }
  0x1a   : > { %248 = vadd.xlane.f32.xlu1 %v247_v21  ;;  %v233_v24 = vsel %vm231_vm2, %v229_v22, 0.0 }
  0x1b   : > { %v234_v25 = vadd.f32 %v233_v24, %v232_v23 }
  0x1d   : > { %235 = vadd.xlane.f32.xlu0 %v234_v25 }
  0xa6   : > { %v270_v28 = vpop.xlane.xlu0 %269 }
  0xa7   : > { %v249_v29 = vpop.xlane.xlu1 %248  ;;  %v271_v30 = vadd.f32 %v270_v28, %v252_v26 }
  0xa8   : > { %v250_v31 = vadd.f32 %v249_v29, %v240_v27 }
  0xa9   : > { %273 = vst.msk [vmem:[#allocation4] sm:$0x1] %vm211_vm0, %v271_v30 }
  0xaa   : > { %251 = vst.msk [vmem:[#allocation3] sm:$0x7] %vm208_vm3, %v250_v31  ;;  %v236_v33 = vpop.xlane.xlu0 %235 }
  0xab   : > { %v237_v34 = vadd.f32 %v236_v33, %v215_v32 }
  0xad   : > { %239 = vst.msk [vmem:[#allocation2] sm:$0x7] %vm208_vm3, %v237_v34 }
  0xb0   : > { %v279_v35 = vld [vmem:[#allocation4] sm:$0x1] }
  0xb1   : > { %v280_v36 = vadd.f32 1e-09, %v279_v35  ;;  %v278_v43 = vld [vmem:[#allocation3] sm:$0x7]  ;;  %v294_v44 = vrot.slane %v279_v35, %v219_v3 }
  0xb3   : > { %v285_v37 = vrot.slane %v280_v36, %v219_v3 }
  0xb4   : > { %v277_v38 = vld [vmem:[#allocation2] sm:$0x7] }
  0xb5   : > { %433 = vrcp.f32 %v285_v37 }
  0xbf   : > { %v434_v39 = vpop.eup %433 }
  0xc0   : > { %v288_v40 = vmul.f32 %v434_v39, %v277_v38 }
  0xc2   : > { %v289_v41 = vmul.f32 %v288_v40, %v288_v40  ;;  %v297_v42 = vmul.f32 2.0, %v288_v40 }
  0xc4   : > { %v298_v45 = vmul.f32 %v297_v42, %v277_v38  ;;  %v296_v46 = vmul.f32 %v294_v44, %v289_v41 }
  0xc6   : > { %v299_v47 = vsub.f32 %v278_v43, %v298_v45 }
  0xc8   : > { %v300_v48 = vadd.f32 %v299_v47, %v296_v46 }
  0xca   : > { %v301_v49 = vadd.f32 1e-09, %v300_v48 }
  0xcc   : > { %435 = vrcp.f32 %v301_v49 }
  0xd6   : > { %v436_v50 = vpop.eup %435 }
  0xd7   : > { %v303_v51 = vmul.f32 %v436_v50, %v296_v46 }
  0xd9   : > { %437 = vlog2.f32 %v303_v51 }
  0xe3   : > { %v438_v52 = vpop.eup %437 }
  0xe4   : > { %v305_v53 = vmul.f32 0.6931472, %v438_v52 }
  0xe6   : > { %v306_v54 = vmul.f32 0.4342945, %v305_v53 }
  0xe8   : > { %v307_v55 = vmul.f32 10.0, %v306_v54 }
  0xea   : > { %v308_v56 = vsel %vm208_vm3, %v307_v55, -inf }
  0xeb   : > { %v309_v57 = vrot.slane %v308_v56, 4 }
  0xed   : > { %v310_v58 = vmax.f32 %v308_v56, %v309_v57 }
  0xef   : > { %v311_v59 = vrot.slane %v310_v58, 2 }
  0xf1   : > { %v312_v60 = vmax.f32 %v310_v58, %v311_v59 }
  0xf3   : > { %v313_v61 = vrot.slane %v312_v60, 1 }
  0xf5   : > { %v314_v62 = vmax.f32 %v312_v60, %v313_v61 }
  0xf7   : > { %315 = vst.msk [vmem:[%s203_s22] sm:$0x1] %vm211_vm0, %v314_v62 }
  0xf8 PF: > { %s12_s11 = sadd.s32 1, %s461_s11   ;;  %s534_s9 = smov %s457_s10 }
  0xf9   : > { %p9_p5 = scmp.ge.s32.totalorder %s12_s11, 4   ;;  %s535_s10 = smov %s537_s12 }
  0xfb   :  { %11 = sbr.rel (!%p9_p5) target bundleno = 2 (0x2), region = 69 }

</bundles_post_ra>
